<compile_context>
chip_gen: v7x
topology: tpu7x:2x2x1
jax: 0.10.0
libtpu: 0.0.40
codegen_flags: <defaults>
</compile_context>

<pallas_src>
import functools

import jax
import jax.numpy as jnp
from jax.experimental import pallas as pl
from jax.experimental.pallas import tpu as pltpu

_PI = 3.141592653589793
_TWO_PI = 6.283185307179586
_INV_TWO_PI = 0.15915494309189535


def _round_up(a, b):
    return -(-a // b) * b


def _cdiv(a, b):
    return -(-a // b)


def _one_minus_cos(d):
    """1 - cos(d) for arbitrary d, f32 accurate (~1e-7 abs after reduction)."""
    # Range-reduce to r in [-pi, pi]:  r = d - 2*pi*round(d / (2*pi))
    r = d - _TWO_PI * jnp.floor(d * _INV_TWO_PI + 0.5)
    z = r * r
    # 1 - cos(r) = z/2! - z^2/4! + z^3/6! - ... - z^8/16!   (Horner in z)
    poly = 4.779477332387385e-14               # 1/16!
    poly = 1.1470745597729725e-11 - z * poly   # 1/14!
    poly = 2.08767569878681e-09 - z * poly     # 1/12!
    poly = 2.755731922398589e-07 - z * poly    # 1/10!
    poly = 2.48015873015873e-05 - z * poly     # 1/8!
    poly = 1.3888888888888889e-03 - z * poly   # 1/6!
    poly = 4.1666666666666664e-02 - z * poly   # 1/4!
    poly = 0.5 - z * poly                      # 1/2!
    return z * poly


def _cosine_loss_kernel(x_ref, y_ref, o_ref, acc_ref, *,
                        diff_scale, p, final_scale):
    i = pl.program_id(0)

    @pl.when(i == 0)
    def _init():
        acc_ref[...] = jnp.zeros_like(acc_ref)

    d = x_ref[...] - y_ref[...]                # (nsub, 8, lanes) f32
    if diff_scale != 1.0:                      # trace-time: no mul for radians
        d = d * diff_scale
    omc = _one_minus_cos(d)

    v = omc
    for _ in range(int(p) - 1):                # integer p, unrolled at trace
        v = v * omc

    # Reduce only along the leading (sublane-tile) axis: pure VPU adds into a
    # resident (8, lanes) accumulator; the cross-sublane/lane reduce happens
    # once, at finalize.
    acc_ref[...] += jnp.sum(v, axis=0)

    @pl.when(i == pl.num_programs(0) - 1)
    def _finalize():
        # mean (1/n) and user scale folded into one constant.
        o_ref[...] = jnp.sum(acc_ref[...], keepdims=True) * final_scale


def cosine_loss(x, y, *, p=1, degrees=False, scale=1.0,
                lanes=512, block_rows=1024):
    """loss = mean((1 - cos(x - y)) ** p) * scale  (x, y same shape)."""
    assert x.shape == y.shape, (x.shape, y.shape)
    p_int = int(p)
    assert p_int == p and p_int >= 1, "only integer p >= 1 supported"
    # TODO(synk): non-integer p would need exp(p*log(.)) with a zero guard.

    n = x.size
    xf = jnp.ravel(x).astype(jnp.float32)
    yf = jnp.ravel(y).astype(jnp.float32)

    # Lane-dense layout: (rows/8, 8, lanes), lanes a multiple of 128, rows per
    # block a multiple of 8, block sized to amortize per-grid-step overhead.
    rows_needed = _cdiv(n, lanes)
    br = _round_up(min(int(block_rows), _round_up(rows_needed, 8)), 8)
    grid = _cdiv(rows_needed, br)
    total_rows = grid * br
    pad = total_rows * lanes - n
    if pad:
        # Zero padding is exact: (1 - cos(0))^p == 0 contributes nothing.
        xf = jnp.pad(xf, (0, pad))
        yf = jnp.pad(yf, (0, pad))
    x3 = xf.reshape(total_rows // 8, 8, lanes)
    y3 = yf.reshape(total_rows // 8, 8, lanes)
    nsub = br // 8

    kernel = functools.partial(
        _cosine_loss_kernel,
        diff_scale=(_PI / 180.0) if degrees else 1.0,
        p=p_int,
        final_scale=float(scale) / float(n),
    )

    out = pl.pallas_call(
        kernel,
        out_shape=jax.ShapeDtypeStruct((1, 1), jnp.float32),
        grid=(grid,),
        in_specs=[pl.BlockSpec((nsub, 8, lanes), lambda i: (i, 0, 0)),
                  pl.BlockSpec((nsub, 8, lanes), lambda i: (i, 0, 0))],
        out_specs=pl.BlockSpec((1, 1), lambda i: (0, 0)),
        scratch_shapes=[pltpu.VMEM((8, lanes), jnp.float32)],
        compiler_params=pltpu.CompilerParams(
            dimension_semantics=("arbitrary",)),   # reduction axis
    )(x3, y3)
    return out[0, 0]


def _reference(x, y, p=1, degrees=False, scale=1.0):
    if degrees:
        x = jnp.deg2rad(x)
        y = jnp.deg2rad(y)
    return jnp.mean((1.0 - jnp.cos(x - y)) ** p) * scale


if __name__ == "__main__":
    key = jax.random.PRNGKey(0)
    kx, ky = jax.random.split(key)
    shape = (2, 4, 16, 16)
    # Scale by 3 so the range reduction (|d| > pi) is actually exercised.
    x = 3.0 * jax.random.normal(kx, shape, dtype=jnp.float32)
    y = 3.0 * jax.random.normal(ky, shape, dtype=jnp.float32)

    # Default config: p=1, radians, scale=1
    out = cosine_loss(x, y)
    out = jax.block_until_ready(out)
    ref = _reference(x, y)
    assert jnp.allclose(out, ref, atol=1e-3, rtol=1e-3), (float(out), float(ref))

    # Non-default config: p=2, degrees=True, scale=2
    out2 = cosine_loss(x, y, p=2, degrees=True, scale=2.0)
    out2 = jax.block_until_ready(out2)
    ref2 = _reference(x, y, p=2, degrees=True, scale=2.0)
    assert jnp.allclose(out2, ref2, atol=1e-3, rtol=1e-3), (float(out2), float(ref2))

    # Multi-grid-step + ragged-padding path (forces cross-step accumulation).
    shape3 = (4, 16, 40)
    xr = 3.0 * jax.random.normal(kx, shape3, dtype=jnp.float32)
    yr = 3.0 * jax.random.normal(ky, shape3, dtype=jnp.float32)
    out3 = cosine_loss(xr, yr, p=2, lanes=128, block_rows=8)
    out3 = jax.block_until_ready(out3)
    ref3 = _reference(xr, yr, p=2)
    assert jnp.allclose(out3, ref3, atol=1e-3, rtol=1e-3), (float(out3), float(ref3))

    print("KERNEL_OK")
</pallas_src>

<mosaic_0001>
module attributes {stable_mosaic.version = 11 : i64} {
  func.func @_cosine_loss_kernel(%arg0: i32, %arg1: memref<1x8x512xf32, #tpu.memory_space<vmem>>, %arg2: memref<1x8x512xf32, #tpu.memory_space<vmem>>, %arg3: memref<1x1xf32, #tpu.memory_space<vmem>>, %arg4: memref<8x512xf32, #tpu.memory_space<vmem>>) attributes {dimension_semantics = [#tpu.dimension_semantics<arbitrary>], iteration_bounds = array<i64: 1>, scalar_prefetch = 0 : i64, scratch_operands = 1 : i64, tpu.core_type = #tpu.core_type<tc>, window_params = [{transform_indices = @transform_0, window_bounds = array<i64: 1, 8, 512>}, {transform_indices = @transform_1, window_bounds = array<i64: 1, 8, 512>}, {pipeline_mode = #tpu.pipeline_mode<synchronous>, transform_indices = @transform_2, window_bounds = array<i64: 1, 1>}]} {
    %c0_i32 = arith.constant 0 : i32
    %0 = arith.cmpi eq, %arg0, %c0_i32 : i32
    %1 = arith.extui %0 : i1 to i32
    %c0_i32_0 = arith.constant 0 : i32
    %2 = arith.cmpi ne, %1, %c0_i32_0 : i32
    scf.if %2 {
      %cst_23 = arith.constant 0.000000e+00 : f32
      %45 = vector.broadcast %cst_23 : f32 to vector<8x512xf32>
      %c0_24 = arith.constant 0 : index
      %c0_25 = arith.constant 0 : index
      %46 = vector.load %arg4[%c0_24, %c0_25] : memref<8x512xf32, #tpu.memory_space<vmem>>, vector<8x512xf32>
      tpu.vector_store %arg4[%c0_24, %c0_25], %45 {strides = array<i32>} : memref<8x512xf32, #tpu.memory_space<vmem>>, vector<8x512xf32>,
    } else {
    }
    %c0 = arith.constant 0 : index
    %c0_1 = arith.constant 0 : index
    %c0_2 = arith.constant 0 : index
    %3 = vector.load %arg1[%c0, %c0_1, %c0_2] : memref<1x8x512xf32, #tpu.memory_space<vmem>>, vector<1x8x512xf32>
    %c0_3 = arith.constant 0 : index
    %c0_4 = arith.constant 0 : index
    %c0_5 = arith.constant 0 : index
    %4 = vector.load %arg2[%c0_3, %c0_4, %c0_5] : memref<1x8x512xf32, #tpu.memory_space<vmem>>, vector<1x8x512xf32>
    %5 = arith.subf %3, %4 : vector<1x8x512xf32>
    %cst = arith.constant 0.159154937 : f32
    %6 = vector.broadcast %cst : f32 to vector<1x8x512xf32>
    %7 = arith.mulf %5, %6 : vector<1x8x512xf32>
    %cst_6 = arith.constant 5.000000e-01 : f32
    %8 = vector.broadcast %cst_6 : f32 to vector<1x8x512xf32>
    %9 = arith.addf %7, %8 : vector<1x8x512xf32>
    %10 = math.floor %9 : vector<1x8x512xf32>
    %cst_7 = arith.constant 6.28318548 : f32
    %11 = vector.broadcast %cst_7 : f32 to vector<1x8x512xf32>
    %12 = arith.mulf %11, %10 : vector<1x8x512xf32>
    %13 = arith.subf %5, %12 : vector<1x8x512xf32>
    %14 = arith.mulf %13, %13 : vector<1x8x512xf32>
    %cst_8 = arith.constant 4.77947726E-14 : f32
    %15 = vector.broadcast %cst_8 : f32 to vector<1x8x512xf32>
    %16 = arith.mulf %14, %15 : vector<1x8x512xf32>
    %cst_9 = arith.constant 1.14707454E-11 : f32
    %17 = vector.broadcast %cst_9 : f32 to vector<1x8x512xf32>
    %18 = arith.subf %17, %16 : vector<1x8x512xf32>
    %19 = arith.mulf %14, %18 : vector<1x8x512xf32>
    %cst_10 = arith.constant 2.08767559E-9 : f32
    %20 = vector.broadcast %cst_10 : f32 to vector<1x8x512xf32>
    %21 = arith.subf %20, %19 : vector<1x8x512xf32>
    %22 = arith.mulf %14, %21 : vector<1x8x512xf32>
    %cst_11 = arith.constant 2.755732E-7 : f32
    %23 = vector.broadcast %cst_11 : f32 to vector<1x8x512xf32>
    %24 = arith.subf %23, %22 : vector<1x8x512xf32>
    %25 = arith.mulf %14, %24 : vector<1x8x512xf32>
    %cst_12 = arith.constant 2.48015876E-5 : f32
    %26 = vector.broadcast %cst_12 : f32 to vector<1x8x512xf32>
    %27 = arith.subf %26, %25 : vector<1x8x512xf32>
    %28 = arith.mulf %14, %27 : vector<1x8x512xf32>
    %cst_13 = arith.constant 0.00138888892 : f32
    %29 = vector.broadcast %cst_13 : f32 to vector<1x8x512xf32>
    %30 = arith.subf %29, %28 : vector<1x8x512xf32>
    %31 = arith.mulf %14, %30 : vector<1x8x512xf32>
    %cst_14 = arith.constant 0.0416666679 : f32
    %32 = vector.broadcast %cst_14 : f32 to vector<1x8x512xf32>
    %33 = arith.subf %32, %31 : vector<1x8x512xf32>
    %34 = arith.mulf %14, %33 : vector<1x8x512xf32>
    %cst_15 = arith.constant 5.000000e-01 : f32
    %35 = vector.broadcast %cst_15 : f32 to vector<1x8x512xf32>
    %36 = arith.subf %35, %34 : vector<1x8x512xf32>
    %37 = arith.mulf %14, %36 : vector<1x8x512xf32>
    %c0_16 = arith.constant 0 : index
    %c0_17 = arith.constant 0 : index
    %38 = vector.load %arg4[%c0_16, %c0_17] : memref<8x512xf32, #tpu.memory_space<vmem>>, vector<8x512xf32>
    %cst_18 = arith.constant dense<0.000000e+00> : vector<8x512xf32>
    %39 = vector.multi_reduction <add>, %37, %cst_18 [0] : vector<1x8x512xf32> to vector<8x512xf32>
    %40 = arith.addf %38, %39 : vector<8x512xf32>
    %c0_19 = arith.constant 0 : index
    %c0_20 = arith.constant 0 : index
    %41 = vector.load %arg4[%c0_19, %c0_20] : memref<8x512xf32, #tpu.memory_space<vmem>>, vector<8x512xf32>
    tpu.vector_store %arg4[%c0_19, %c0_20], %40 {strides = array<i32>} : memref<8x512xf32, #tpu.memory_space<vmem>>, vector<8x512xf32>,
    %c0_i32_21 = arith.constant 0 : i32
    %42 = arith.cmpi eq, %arg0, %c0_i32_21 : i32
    %43 = arith.extui %42 : i1 to i32
    %c0_i32_22 = arith.constant 0 : i32
    %44 = arith.cmpi ne, %43, %c0_i32_22 : i32
    scf.if %44 {
      %c0_23 = arith.constant 0 : index
      %c0_24 = arith.constant 0 : index
      %45 = vector.load %arg4[%c0_23, %c0_24] : memref<8x512xf32, #tpu.memory_space<vmem>>, vector<8x512xf32>
      %46 = vector.shape_cast %45 : vector<8x512xf32> to vector<1x8x512xf32>
      %cst_25 = arith.constant dense<0.000000e+00> : vector<1xf32>
      %47 = vector.multi_reduction <add>, %46, %cst_25 [1, 2] : vector<1x8x512xf32> to vector<1xf32>
      %48 = vector.shape_cast %47 : vector<1xf32> to vector<1x1x1xf32>
      %49 = vector.extract %48[0, 0, 0] : f32 from vector<1x1x1xf32>
      %50 = vector.broadcast %49 : f32 to vector<1x1xf32>
      %cst_26 = arith.constant 4.8828125E-4 : f32
      %51 = vector.broadcast %cst_26 : f32 to vector<1x1xf32>
      %52 = arith.mulf %50, %51 : vector<1x1xf32>
      %c0_27 = arith.constant 0 : index
      %c0_28 = arith.constant 0 : index
      %53 = vector.load %arg3[%c0_27, %c0_28] : memref<1x1xf32, #tpu.memory_space<vmem>>, vector<1x1xf32>
      tpu.vector_store %arg3[%c0_27, %c0_28], %52 {strides = array<i32>} : memref<1x1xf32, #tpu.memory_space<vmem>>, vector<1x1xf32>,
    } else {
    }
    return
  }
  func.func @transform_0(%arg0: i32) -> (i32, i32, i32) {
    %c0_i32 = arith.constant 0 : i32
    %c0_i32_0 = arith.constant 0 : i32
    %c0_i32_1 = arith.constant 0 : i32
    return %arg0, %c0_i32, %c0_i32_0 : i32, i32, i32
  }
  func.func @transform_1(%arg0: i32) -> (i32, i32, i32) {
    %c0_i32 = arith.constant 0 : i32
    %c0_i32_0 = arith.constant 0 : i32
    %c0_i32_1 = arith.constant 0 : i32
    return %arg0, %c0_i32, %c0_i32_0 : i32, i32, i32
  }
  func.func @transform_2(%arg0: i32) -> (i32, i32) {
    %c0_i32 = arith.constant 0 : i32
    %c0_i32_0 = arith.constant 0 : i32
    %c0_i32_1 = arith.constant 0 : i32
    return %c0_i32, %c0_i32_0 : i32, i32
  }
}

</mosaic_0001>

<bundles_post_ra>
// kernel: tpu_custom_call.1
= control target key start
LH: loop header
LB: loop body
LE: loop exit
PB: predicated region body
PF: predicated region fallthrough
CT: control target
= control target key end

     0   :  { %7 = vsyncpa [#allocation4], 0  ;;  %s326_s0 = inlined_call_operand.hbm [shape: f32[1,8,512], index: 0, kind: input, shape index: {}]   ;;  %s327_s1 = inlined_call_operand.hbm [shape: f32[1,8,512], index: 1, kind: input, shape index: {}]   ;;  %s328_s2 = inlined_call_operand.hbm [shape: f32[1,1], index: 2, kind: output, shape index: {}]  }
   0x1   :  { %8 = vsyncpa [#allocation7], 0 }
   0x2   :  { %9 = vsyncpa [#allocation5], 0  ;;  %s272_s9 = smov [#allocation3]   ;;  %s273_s11 = smov [#allocation6]  }
   0x3   :  { %s16_s10 = sshll.u32 %s272_s9, 4  ;;  %s26_s12 = sshll.u32 %s273_s11, 4  ;;  %s17_s10 = int_to_ptr.vmem [resolvable:$true] %s16_s10  ;;  %s27_s12 = int_to_ptr.vmem [resolvable:$true] %s26_s12 }
   0x4   :  { %s200_s15 = scalar_lea.hbm %s326_s0, 512 }
   0x5   :  { %p201_p0 = scmp.ne.s32.totalorder %s326_s0, %s200_s15  ;;  %p204_p1 = scmp.lt.u32.totalorder %s200_s15, %s326_s0 }
   0x7   :  { %p206_p2 = pnand %p204_p1, %p201_p0 }
   0x9   :  { %209 = shalt.err (!%p206_p2)
}
   0xa   :  { %s210_s20 = scalar_lea.vmem %s17_s10, 512  ;;  %p215_p4 = scmp.lt.s32.totalorder %s17_s10, %s17_s10 }
   0xb   :  { %p211_p3 = scmp.ne.s32.totalorder %s17_s10, %s210_s20  ;;  %p216_p5 = scmp.lt.s32.totalorder %s210_s20, %s210_s20 }
   0xd   :  { %p217_p6 = por %p216_p5, %p215_p4 }
   0xf   :  { %p218_p7 = pnand %p217_p6, %p211_p3 }
  0x11   :  { %221 = shalt.err (!%p218_p7)
}
  0x12   :  { %19 = dma.hbm_to_vmem [thread:$0]  %s326_s0, 512, %s17_s10, [#allocation4]  }
  0x13   :  { %s222_s25 = scalar_lea.hbm %s327_s1, 512 }
  0x14   :  { %p223_p8 = scmp.ne.s32.totalorder %s327_s1, %s222_s25  ;;  %p226_p9 = scmp.lt.u32.totalorder %s222_s25, %s327_s1 }
  0x16   :  { %p228_p10 = pnand %p226_p9, %p223_p8 }
  0x18   :  { %231 = shalt.err (!%p228_p10)
}
  0x19   :  { %s232_s30 = scalar_lea.vmem %s27_s12, 512  ;;  %p237_p12 = scmp.lt.s32.totalorder %s27_s12, %s27_s12 }
  0x1a   :  { %p233_p11 = scmp.ne.s32.totalorder %s27_s12, %s232_s30  ;;  %p238_p13 = scmp.lt.s32.totalorder %s232_s30, %s232_s30 }
  0x1c   :  { %p239_p0 = por %p238_p13, %p237_p12 }
  0x1e   :  { %p240_p1 = pnand %p239_p0, %p233_p11 }
  0x20   :  { %243 = shalt.err (!%p240_p1)
}
  0x21   :  { %29 = dma.hbm_to_vmem [thread:$0]  %s327_s1, 512, %s27_s12, [#allocation7]  }
  0x22   :  { %266 = dma.done.wait [#allocation4], 512  }
  0x23   :  { %267 = vsyncadd [#allocation4], 4294966784 }
  0x24   :  { %268 = dma.done.wait [#allocation7], 512  }
  0x25   :  { %269 = vsyncadd [#allocation7], 4294966784  ;;  %v44_v0 = vld [vmem:[#allocation3] sm:$0xff]  ;;  %v45_v1 = vld [vmem:[#allocation3 + $0x8] sm:$0xff]  ;;  %s274_s1 = smov [#allocation8]   ;;  %vm177_vm0 = vcmask 0  }
  0x26   :  { %v46_v2 = vld [vmem:[#allocation3 + $0x10] sm:$0xff]  ;;  %v47_v3 = vld [vmem:[#allocation3 + $0x18] sm:$0xff]  ;;  %v48_v4 = vld [vmem:[#allocation6] sm:$0xff]  ;;  %s185_s4 = sshll.u32 %s274_s1, 4  ;;  %s186_s4 = int_to_ptr.vmem [resolvable:$true] %s185_s4 }
  0x27   :  { %v49_v5 = vld [vmem:[#allocation6 + $0x8] sm:$0xff]  ;;  %v50_v6 = vld [vmem:[#allocation6 + $0x10] sm:$0xff]  ;;  %v51_v7 = vld [vmem:[#allocation6 + $0x18] sm:$0xff]  ;;  %v52_v8 = vsub.f32 %v44_v0, %v48_v4  ;;  %s244_s6 = scalar_lea.vmem %s186_s4, 16  ;;  %s248_s7 = scalar_lea.vmem %s186_s4, 32 }
  0x28   :  { %v53_v9 = vsub.f32 %v45_v1, %v49_v5  ;;  %v54_v10 = vsub.f32 %v46_v2, %v50_v6  ;;  %v55_v11 = vsub.f32 %v47_v3, %v51_v7  ;;  %p245_p2 = scmp.ne.s32.totalorder %s186_s4, %s244_s6  ;;  %p249_p3 = scmp.lt.s32.totalorder %s186_s4, %s186_s4 }
  0x29   :  { %v56_v12 = vmul.f32 0.15915494, %v52_v8  ;;  %p250_p4 = scmp.lt.s32.totalorder %s248_s7, %s244_s6 }
  0x2a   :  { %v57_v13 = vmul.f32 0.15915494, %v53_v9  ;;  %v58_v14 = vmul.f32 0.15915494, %v54_v10  ;;  %v59_v15 = vmul.f32 0.15915494, %v55_v11 }
  0x2b   :  { %v60_v16 = vadd.f32 0.5, %v56_v12  ;;  %p251_p5 = por %p250_p4, %p249_p3 }
  0x2c   :  { %v61_v17 = vadd.f32 0.5, %v57_v13  ;;  %v62_v18 = vadd.f32 0.5, %v58_v14  ;;  %v63_v19 = vadd.f32 0.5, %v59_v15 }
  0x2d   :  { %v64_v20 = vfloor.f32 %v60_v16  ;;  %p252_p6 = pnand %p251_p5, %p245_p2 }
  0x2e   :  { %v65_v21 = vfloor.f32 %v61_v17  ;;  %v66_v22 = vfloor.f32 %v62_v18  ;;  %v67_v23 = vfloor.f32 %v63_v19 }
  0x2f   :  { %v68_v24 = vmul.f32 6.2831855, %v64_v20 }
  0x30   :  { %v69_v25 = vmul.f32 6.2831855, %v65_v21  ;;  %v70_v26 = vmul.f32 6.2831855, %v66_v22  ;;  %v71_v27 = vmul.f32 6.2831855, %v67_v23 }
  0x31   :  { %v72_v28 = vsub.f32 %v52_v8, %v68_v24 }
  0x32   :  { %v73_v29 = vsub.f32 %v53_v9, %v69_v25  ;;  %v74_v30 = vsub.f32 %v54_v10, %v70_v26  ;;  %v75_v31 = vsub.f32 %v55_v11, %v71_v27 }
  0x33   :  { %v76_v32 = vmul.f32 %v72_v28, %v72_v28 }
  0x34   :  { %v77_v33 = vmul.f32 %v73_v29, %v73_v29  ;;  %v78_v34 = vmul.f32 %v74_v30, %v74_v30  ;;  %v79_v35 = vmul.f32 %v75_v31, %v75_v31 }
  0x35   :  { %v80_v36 = vmul.f32 4.7794773e-14, %v76_v32 }
  0x36   :  { %v81_v37 = vmul.f32 4.7794773e-14, %v77_v33  ;;  %v82_v38 = vmul.f32 4.7794773e-14, %v78_v34  ;;  %v83_v39 = vmul.f32 4.7794773e-14, %v79_v35 }
  0x37   :  { %v84_v40 = vsub.f32 1.1470745e-11, %v80_v36 }
  0x38   :  { %v85_v41 = vsub.f32 1.1470745e-11, %v81_v37  ;;  %v86_v42 = vsub.f32 1.1470745e-11, %v82_v38  ;;  %v87_v43 = vsub.f32 1.1470745e-11, %v83_v39 }
  0x39   :  { %v88_v44 = vmul.f32 %v84_v40, %v76_v32 }
  0x3a   :  { %v89_v45 = vmul.f32 %v85_v41, %v77_v33  ;;  %v90_v46 = vmul.f32 %v86_v42, %v78_v34  ;;  %v91_v47 = vmul.f32 %v87_v43, %v79_v35 }
  0x3b   :  { %v92_v48 = vsub.f32 2.0876756e-09, %v88_v44 }
  0x3c   :  { %v93_v49 = vsub.f32 2.0876756e-09, %v89_v45  ;;  %v94_v50 = vsub.f32 2.0876756e-09, %v90_v46  ;;  %v95_v51 = vsub.f32 2.0876756e-09, %v91_v47 }
  0x3d   :  { %v96_v52 = vmul.f32 %v92_v48, %v76_v32 }
  0x3e   :  { %v97_v53 = vmul.f32 %v93_v49, %v77_v33  ;;  %v98_v54 = vmul.f32 %v94_v50, %v78_v34  ;;  %v99_v55 = vmul.f32 %v95_v51, %v79_v35 }
  0x3f   :  { %v100_v56 = vsub.f32 2.755732e-07, %v96_v52 }
  0x40   :  { %v101_v57 = vsub.f32 2.755732e-07, %v97_v53  ;;  %v102_v58 = vsub.f32 2.755732e-07, %v98_v54  ;;  %v103_v59 = vsub.f32 2.755732e-07, %v99_v55 }
  0x41   :  { %v104_v60 = vmul.f32 %v100_v56, %v76_v32 }
  0x42   :  { %v105_v61 = vmul.f32 %v101_v57, %v77_v33  ;;  %v106_v62 = vmul.f32 %v102_v58, %v78_v34  ;;  %v107_v63 = vmul.f32 %v103_v59, %v79_v35 }
  0x43   :  { %v108_v0 = vsub.f32 2.4801588e-05, %v104_v60 }
  0x44   :  { %v109_v1 = vsub.f32 2.4801588e-05, %v105_v61  ;;  %v110_v2 = vsub.f32 2.4801588e-05, %v106_v62  ;;  %v111_v3 = vsub.f32 2.4801588e-05, %v107_v63 }
  0x45   :  { %v112_v4 = vmul.f32 %v108_v0, %v76_v32 }
  0x46   :  { %v113_v5 = vmul.f32 %v109_v1, %v77_v33  ;;  %v114_v6 = vmul.f32 %v110_v2, %v78_v34  ;;  %v115_v7 = vmul.f32 %v111_v3, %v79_v35 }
  0x47   :  { %v116_v8 = vsub.f32 0.0013888889, %v112_v4 }
  0x48   :  { %v117_v9 = vsub.f32 0.0013888889, %v113_v5  ;;  %v118_v10 = vsub.f32 0.0013888889, %v114_v6  ;;  %v119_v11 = vsub.f32 0.0013888889, %v115_v7 }
  0x49   :  { %v120_v12 = vmul.f32 %v116_v8, %v76_v32 }
  0x4a   :  { %v121_v13 = vmul.f32 %v117_v9, %v77_v33  ;;  %v122_v14 = vmul.f32 %v118_v10, %v78_v34  ;;  %v123_v15 = vmul.f32 %v119_v11, %v79_v35 }
  0x4b   :  { %v124_v16 = vsub.f32 0.041666668, %v120_v12 }
  0x4c   :  { %v125_v17 = vsub.f32 0.041666668, %v121_v13  ;;  %v126_v18 = vsub.f32 0.041666668, %v122_v14  ;;  %v127_v19 = vsub.f32 0.041666668, %v123_v15 }
  0x4d   :  { %v128_v20 = vmul.f32 %v124_v16, %v76_v32 }
  0x4e   :  { %v129_v21 = vmul.f32 %v125_v17, %v77_v33  ;;  %v130_v22 = vmul.f32 %v126_v18, %v78_v34  ;;  %v131_v23 = vmul.f32 %v127_v19, %v79_v35 }
  0x4f   :  { %v132_v24 = vsub.f32 0.5, %v128_v20 }
  0x50   :  { %v133_v25 = vsub.f32 0.5, %v129_v21  ;;  %v134_v26 = vsub.f32 0.5, %v130_v22  ;;  %v135_v27 = vsub.f32 0.5, %v131_v23 }
  0x51   :  { %v136_v28 = vmul.f32 %v132_v24, %v76_v32 }
  0x52   :  { %v137_v29 = vmul.f32 %v133_v25, %v77_v33  ;;  %v138_v30 = vmul.f32 %v134_v26, %v78_v34  ;;  %v139_v31 = vmul.f32 %v135_v27, %v79_v35 }
  0x54   :  { %v163_v36 = vadd.f32 %v137_v29, %v136_v28 }
  0x56   :  { %v164_v37 = vadd.f32 %v163_v36, %v138_v30 }
  0x58   :  { %v165_v38 = vadd.f32 %v164_v37, %v139_v31 }
  0x5a   :  { %166 = vadd.xlane.f32.xlu0 %v165_v38 }
  0xe7   :  { %v167_v39 = vpop.xlane.xlu0 %166 }
  0xe8   :  { %v168_v40 = vrot.slane %v167_v39, 4 }
  0xea   :  { %v169_v41 = vadd.f32 %v168_v40, %v167_v39 }
  0xec   :  { %v170_v42 = vrot.slane %v169_v41, 2 }
  0xee   :  { %v171_v43 = vadd.f32 %v170_v42, %v169_v41 }
  0xf0   :  { %v172_v44 = vrot.slane %v171_v43, 1 }
  0xf2   :  { %v173_v45 = vadd.f32 %v172_v44, %v171_v43 }
  0xf4   :  { %195 = vpush %v173_v45 }
 0x125   :  { %s196_s5 = spop %195 }
 0x126   :  { %v175_v46 = vstv %s196_s5 }
 0x127   :  { %v176_v32 = vmul.f32 0.00048828125, %v175_v46 }
 0x129   :  { %178 = vst.msk [vmem:[#allocation8] sm:$0x1] %vm177_vm0, %v176_v32 }
 0x12a   :  { %255 = shalt.err (!%p252_p6)
}
 0x12b   :  { %s256_s10 = scalar_lea.hbm %s328_s2, 16 }
 0x12c   :  { %p257_p7 = scmp.ne.s32.totalorder %s328_s2, %s256_s10  ;;  %p260_p8 = scmp.lt.u32.totalorder %s256_s10, %s328_s2 }
 0x12e   :  { %p262_p9 = pnand %p260_p8, %p257_p7 }
 0x130   :  { %265 = shalt.err (!%p262_p9)
}
 0x131   :  { %188 = dma.vmem_to_hbm [thread:$0]  %s186_s4, 16, %s328_s2, [#allocation5]  }
 0x132   :  { %270 = dma.done.wait [#allocation5], 16  }
 0x133   :  { %271 = vsyncadd [#allocation5], 4294967280 }
 0x134   :  { %192 = vsyncpa [#allocation4], 1 }
 0x135   :  { %193 = vsyncpa [#allocation7], 1 }
 0x136   :  { %194 = vsyncpa [#allocation5], 1 }

</bundles_post_ra>
